<compile_context>
chip_gen: v7x
topology: tpu7x:2x2x1
jax: 0.10.0
libtpu: 0.0.40
codegen_flags: <defaults>
</compile_context>

<pallas_src>
import functools

import jax
import jax.numpy as jnp
from jax.experimental import pallas as pl
from jax.experimental.pallas import tpu as pltpu

_MIB = 1024 * 1024


def _triplet_loss_kernel(a_ref, p_ref, n_ref, out_ref, *,
                         margin, batch, block_rows, num_blocks, accumulate):
    # (TB, D) tiles; cast to f32 for the squared-diff math (no-op for f32
    # inputs; required on v5e which has no bf16 VPU anyway).
    a = a_ref[...].astype(jnp.float32)
    p = p_ref[...].astype(jnp.float32)
    n = n_ref[...].astype(jnp.float32)

    dp = a - p
    dn = a - n
    # Fused: (a-p)^2 - (a-n)^2 -> ONE cross-lane (XLU) reduce per row.
    d = dp * dp - dn * dn                                     # (TB, D)  VPU
    d_sum = jnp.sum(d, axis=1, keepdims=True)                 # (TB, 1)  XLU
    losses = jnp.maximum(d_sum + jnp.float32(margin), 0.0)    # (TB, 1)

    if accumulate:
        @pl.when(pl.program_id(0) == 0)
        def _():
            out_ref[...] = jnp.zeros_like(out_ref)

    def emit(block_sum):  # block_sum: (1, 1)
        # Lane-dense (8, 128) unmasked full-tile store; wrapper reads [0, 0]
        # of each tile (keep these two in sync).
        tile = jnp.broadcast_to(block_sum, out_ref.shape)
        if accumulate:
            out_ref[...] += tile
        else:
            out_ref[...] = tile

    has_tail = (batch % block_rows) != 0
    if not has_tail:
        # No padded rows anywhere: no iota / compare / select on any step.
        emit(jnp.sum(losses, axis=0, keepdims=True))
    else:
        is_last = pl.program_id(0) == num_blocks - 1
        valid_tail = batch - (num_blocks - 1) * block_rows    # static int

        @pl.when(is_last)
        def _():
            # Mask AFTER the axis-1 reduce so garbage in padded rows stays
            # confined to those rows.
            rows = jax.lax.broadcasted_iota(jnp.int32, losses.shape, 0)
            masked = jnp.where(rows < valid_tail, losses, 0.0)
            emit(jnp.sum(masked, axis=0, keepdims=True))

        @pl.when(jnp.logical_not(is_last))
        def _():
            emit(jnp.sum(losses, axis=0, keepdims=True))


def _vmem_budgets():
    """Generation-aware VMEM budgets.

    Returns (input_working_set_budget_bytes, vmem_limit_bytes, is_v7x).
    Defaults are the v7x-safe numbers (64 MiB physical VMEM per TC); on
    v5e/v6e (128 MiB physical) the budget is raised — the tile-size curve is
    nearly flat past ~4 MiB per tile, so the extra headroom is a small, free win.
    """
    vmem_cap = None
    try:
        vmem_cap = getattr(pltpu.get_tpu_info(), "vmem_capacity_bytes", None)
    except Exception:
        vmem_cap = None
    if vmem_cap is not None and vmem_cap >= 100 * _MIB:
        # v5e / v6e: 128 MiB physical VMEM, single TensorCore.
        return 56 * _MIB, 80 * _MIB, False
    if vmem_cap is not None and vmem_cap <= 80 * _MIB:
        # v7x: 64 MiB physical VMEM per TC, two TensorCores.
        return 24 * _MIB, 40 * _MIB, True
    # Unknown generation: use the v7x-safe budget, assume single-core layout.
    return 24 * _MIB, 40 * _MIB, False


def _sublane_align(itemsize):
    # f32 -> 8 rows/vreg group, bf16 -> 16, int8/fp8 -> 32.
    return max(8, 32 // max(1, itemsize))


def _choose_block_rows(batch, dim, itemsize, working_set_budget):
    # Per-tile-row VMEM working set:
    #   * 3 inputs x 2 pipeline buffers (BlockSpec double-buffering)
    #   * f32 intermediates: dp, dn, d (+ the f32 casts of a/p/n when inputs
    #     are narrower than f32) so bf16 inputs don't blow past the scoped
    #     limit or get re-tiled by the compiler.
    per_row_inputs = 3 * 2 * dim * itemsize
    n_f32_tmps = 3 if itemsize >= 4 else 6
    per_row_tmps = n_f32_tmps * dim * 4
    tb_budget = working_set_budget // max(1, per_row_inputs + per_row_tmps)

    # Byte-based per-input-tile cap (~4 MiB): the measured roofline curve is
    # flat past ~2-4 MiB, and there is deliberately NO row-count cap so
    # small-D inputs still get multi-MiB tiles.
    tb_cap = (4 * _MIB) // max(1, dim * itemsize)

    tb = min(int(tb_budget), int(tb_cap))

    align = _sublane_align(itemsize)
    tb = max(align, (tb // align) * align)
    if tb >= batch:
        return batch                      # single full-extent block (always legal)
    return tb


def triplet_loss(anchor, positive, negative, margin=1.0, size_average=True,
                 block_rows=None, scheme="auto"):
    """Pallas implementation of TripletLoss1.forward.

    scheme: "auto" | "accumulate" | "partials" (both schemes are numerically
    identical; "partials" exists to enable dual-TensorCore sharding on v7x).
    """
    B, D = anchor.shape
    assert positive.shape == (B, D) and negative.shape == (B, D)

    itemsize = jnp.dtype(anchor.dtype).itemsize
    ws_budget, vmem_limit, is_v7x = _vmem_budgets()

    if block_rows is None:
        block_rows = _choose_block_rows(B, D, itemsize, ws_budget)
    if block_rows >= B:
        block_rows = B                    # full-extent block: always legal
    else:
        align = _sublane_align(itemsize)
        block_rows = max(align, (block_rows // align) * align)

    num_blocks = pl.cdiv(B, block_rows)

    if scheme == "auto":
        # Per-block partials only pay off where they enable dual-TC sharding
        # (v7x). On single-TC chips a resident accumulator avoids the
        # (num_blocks*8,128) HBM writeback and the wrapper-side strided
        # gather+sum launch.
        scheme = "partials" if (is_v7x and num_blocks >= 2) else "accumulate"
    accumulate = (scheme == "accumulate")

    kernel = functools.partial(
        _triplet_loss_kernel,
        margin=float(margin),
        batch=B,
        block_rows=block_rows,
        num_blocks=int(num_blocks),
        accumulate=accumulate,
    )

    in_spec = pl.BlockSpec((block_rows, D), lambda i: (i, 0))

    if accumulate:
        out_shape = jax.ShapeDtypeStruct((8, 128), jnp.float32)
        out_spec = pl.BlockSpec((8, 128), lambda i: (0, 0))   # resident accumulator
        dim_sem = ("arbitrary",)
    else:
        out_shape = jax.ShapeDtypeStruct((num_blocks * 8, 128), jnp.float32)
        out_spec = pl.BlockSpec((8, 128), lambda i: (i, 0))
        if is_v7x and num_blocks >= 2 and hasattr(pltpu, "CORE_PARALLEL"):
            dim_sem = (pltpu.CORE_PARALLEL,)  # shard blocks across both TCs
        else:
            dim_sem = ("parallel",)

    out = pl.pallas_call(
        kernel,
        out_shape=out_shape,
        grid_spec=pltpu.PrefetchScalarGridSpec(
            num_scalar_prefetch=0,
            grid=(num_blocks,),
            in_specs=[in_spec, in_spec, in_spec],
            out_specs=out_spec,
        ),
        compiler_params=pltpu.CompilerParams(
            dimension_semantics=dim_sem,
            vmem_limit_bytes=vmem_limit,
        ),
    )(anchor, positive, negative)

    if accumulate:
        total = out[0, 0]
    else:
        # Each block's partial sum sits at row 8*i, lane 0 of its tile.
        total = jnp.sum(out[::8, 0])

    return total / B if size_average else total


def triplet_loss_ref(anchor, positive, negative, margin=1.0, size_average=True):
    """Pure-JAX reference matching the PyTorch module exactly."""
    dp = jnp.sum((anchor - positive) ** 2, axis=1)
    dn = jnp.sum((anchor - negative) ** 2, axis=1)
    losses = jax.nn.relu(dp - dn + margin)
    return jnp.mean(losses) if size_average else jnp.sum(losses)


if __name__ == "__main__":
    # Deterministic synthetic inputs. B=50 with 16-row blocks exercises the
    # multi-block path AND the masked partial tail block (50 % 16 != 0).
    key = jax.random.PRNGKey(0)
    ka, kp, kn = jax.random.split(key, 3)
    B, D = 50, 32
    anchor = jax.random.normal(ka, (B, D), dtype=jnp.float32)
    positive = jax.random.normal(kp, (B, D), dtype=jnp.float32)
    negative = jax.random.normal(kn, (B, D), dtype=jnp.float32)

    # margin is a module hyperparameter (default None in __init__, but forward
    # requires a numeric value) — fix it deterministically in-script.
    margin = 1.0

    out_mean = triplet_loss(anchor, positive, negative, margin=margin,
                            size_average=True, block_rows=16)
    out_sum = triplet_loss(anchor, positive, negative, margin=margin,
                           size_average=False, block_rows=16)
    out_part = triplet_loss(anchor, positive, negative, margin=margin,
                            size_average=True, block_rows=16, scheme="partials")
    out_auto = triplet_loss(anchor, positive, negative, margin=margin,
                            size_average=True)  # auto block_rows (single block)
    jax.block_until_ready((out_mean, out_sum, out_part, out_auto))

    ref_mean = triplet_loss_ref(anchor, positive, negative, margin=margin,
                                size_average=True)
    ref_sum = triplet_loss_ref(anchor, positive, negative, margin=margin,
                               size_average=False)

    assert jnp.allclose(out_mean, ref_mean, atol=1e-4, rtol=1e-5), (out_mean, ref_mean)
    assert jnp.allclose(out_sum, ref_sum, atol=1e-4, rtol=1e-5), (out_sum, ref_sum)
    assert jnp.allclose(out_part, ref_mean, atol=1e-4, rtol=1e-5), (out_part, ref_mean)
    assert jnp.allclose(out_auto, ref_mean, atol=1e-4, rtol=1e-5), (out_auto, ref_mean)

    print("KERNEL_OK")
</pallas_src>

<mosaic_0001>
module attributes {stable_mosaic.version = 11 : i64} {
  func.func @_triplet_loss_kernel(%arg0: i32, %arg1: memref<16x32xf32, #tpu.memory_space<vmem>>, %arg2: memref<16x32xf32, #tpu.memory_space<vmem>>, %arg3: memref<16x32xf32, #tpu.memory_space<vmem>>, %arg4: memref<8x128xf32, #tpu.memory_space<vmem>>) attributes {dimension_semantics = [#tpu.dimension_semantics<arbitrary>], iteration_bounds = array<i64: 4>, scalar_prefetch = 0 : i64, scratch_operands = 0 : i64, tpu.core_type = #tpu.core_type<tc>, window_params = [{transform_indices = @transform_0, window_bounds = array<i64: 16, 32>}, {transform_indices = @transform_1, window_bounds = array<i64: 16, 32>}, {transform_indices = @transform_2, window_bounds = array<i64: 16, 32>}, {pipeline_mode = #tpu.pipeline_mode<synchronous>, transform_indices = @transform_3, window_bounds = array<i64: 8, 128>}]} {
    %c0 = arith.constant 0 : index
    %c0_0 = arith.constant 0 : index
    %0 = vector.load %arg1[%c0, %c0_0] : memref<16x32xf32, #tpu.memory_space<vmem>>, vector<16x32xf32>
    %c0_1 = arith.constant 0 : index
    %c0_2 = arith.constant 0 : index
    %1 = vector.load %arg2[%c0_1, %c0_2] : memref<16x32xf32, #tpu.memory_space<vmem>>, vector<16x32xf32>
    %c0_3 = arith.constant 0 : index
    %c0_4 = arith.constant 0 : index
    %2 = vector.load %arg3[%c0_3, %c0_4] : memref<16x32xf32, #tpu.memory_space<vmem>>, vector<16x32xf32>
    %3 = arith.subf %0, %1 : vector<16x32xf32>
    %4 = arith.subf %0, %2 : vector<16x32xf32>
    %5 = arith.mulf %3, %3 : vector<16x32xf32>
    %6 = arith.mulf %4, %4 : vector<16x32xf32>
    %7 = arith.subf %5, %6 : vector<16x32xf32>
    %cst = arith.constant dense<0.000000e+00> : vector<16xf32>
    %8 = vector.multi_reduction <add>, %7, %cst [1] : vector<16x32xf32> to vector<16xf32>
    %9 = vector.shape_cast %8 : vector<16xf32> to vector<16x1xf32>
    %cst_5 = arith.constant 1.000000e+00 : f32
    %10 = vector.broadcast %cst_5 : f32 to vector<16x1xf32>
    %11 = arith.addf %9, %10 : vector<16x1xf32>
    %cst_6 = arith.constant 0.000000e+00 : f32
    %12 = vector.broadcast %cst_6 : f32 to vector<16x1xf32>
    %13 = arith.maximumf %11, %12 : vector<16x1xf32>
    %c0_i32 = arith.constant 0 : i32
    %14 = arith.cmpi eq, %arg0, %c0_i32 : i32
    %15 = arith.extui %14 : i1 to i32
    %c0_i32_7 = arith.constant 0 : i32
    %16 = arith.cmpi ne, %15, %c0_i32_7 : i32
    scf.if %16 {
      %cst_10 = arith.constant 0.000000e+00 : f32
      %23 = vector.broadcast %cst_10 : f32 to vector<8x128xf32>
      %c0_11 = arith.constant 0 : index
      %c0_12 = arith.constant 0 : index
      %24 = vector.load %arg4[%c0_11, %c0_12] : memref<8x128xf32, #tpu.memory_space<vmem>>, vector<8x128xf32>
      tpu.vector_store %arg4[%c0_11, %c0_12], %23 {strides = array<i32>} : memref<8x128xf32, #tpu.memory_space<vmem>>, vector<8x128xf32>,
    } else {
    }
    %c3_i32 = arith.constant 3 : i32
    %17 = arith.cmpi eq, %arg0, %c3_i32 : i32
    %18 = arith.extui %17 : i1 to i32
    %c0_i32_8 = arith.constant 0 : i32
    %19 = arith.cmpi ne, %18, %c0_i32_8 : i32
    scf.if %19 {
      %23 = tpu.iota {dimensions = array<i32: 0>} : vector<16x1xi32>
      %c2_i32 = arith.constant 2 : i32
      %24 = vector.broadcast %c2_i32 : i32 to vector<16x1xi32>
      %25 = arith.cmpi slt, %23, %24 : vector<16x1xi32>
      %cst_10 = arith.constant 0.000000e+00 : f32
      %26 = vector.broadcast %cst_10 : f32 to vector<16x1xf32>
      %27 = arith.select %25, %13, %26 : vector<16x1xi1>, vector<16x1xf32>
      %cst_11 = arith.constant dense<0.000000e+00> : vector<1xf32>
      %28 = vector.multi_reduction <add>, %27, %cst_11 [0] : vector<16x1xf32> to vector<1xf32>
      %29 = vector.shape_cast %28 : vector<1xf32> to vector<1x1xf32>
      %30 = vector.shape_cast %29 : vector<1x1xf32> to vector<1x1xf32>
      %31 = vector.broadcast %30 : vector<1x1xf32> to vector<8x128xf32>
      %c0_12 = arith.constant 0 : index
      %c0_13 = arith.constant 0 : index
      %32 = vector.load %arg4[%c0_12, %c0_13] : memref<8x128xf32, #tpu.memory_space<vmem>>, vector<8x128xf32>
      %33 = arith.addf %32, %31 : vector<8x128xf32>
      %c0_14 = arith.constant 0 : index
      %c0_15 = arith.constant 0 : index
      %34 = vector.load %arg4[%c0_14, %c0_15] : memref<8x128xf32, #tpu.memory_space<vmem>>, vector<8x128xf32>
      tpu.vector_store %arg4[%c0_14, %c0_15], %33 {strides = array<i32>} : memref<8x128xf32, #tpu.memory_space<vmem>>, vector<8x128xf32>,
    } else {
    }
    %true = arith.constant true
    %20 = arith.xori %17, %true : i1
    %21 = arith.extui %20 : i1 to i32
    %c0_i32_9 = arith.constant 0 : i32
    %22 = arith.cmpi ne, %21, %c0_i32_9 : i32
    scf.if %22 {
      %cst_10 = arith.constant dense<0.000000e+00> : vector<1xf32>
      %23 = vector.multi_reduction <add>, %13, %cst_10 [0] : vector<16x1xf32> to vector<1xf32>
      %24 = vector.shape_cast %23 : vector<1xf32> to vector<1x1xf32>
      %25 = vector.shape_cast %24 : vector<1x1xf32> to vector<1x1xf32>
      %26 = vector.broadcast %25 : vector<1x1xf32> to vector<8x128xf32>
      %c0_11 = arith.constant 0 : index
      %c0_12 = arith.constant 0 : index
      %27 = vector.load %arg4[%c0_11, %c0_12] : memref<8x128xf32, #tpu.memory_space<vmem>>, vector<8x128xf32>
      %28 = arith.addf %27, %26 : vector<8x128xf32>
      %c0_13 = arith.constant 0 : index
      %c0_14 = arith.constant 0 : index
      %29 = vector.load %arg4[%c0_13, %c0_14] : memref<8x128xf32, #tpu.memory_space<vmem>>, vector<8x128xf32>
      tpu.vector_store %arg4[%c0_13, %c0_14], %28 {strides = array<i32>} : memref<8x128xf32, #tpu.memory_space<vmem>>, vector<8x128xf32>,
    } else {
    }
    return
  }
  func.func @transform_0(%arg0: i32) -> (i32, i32) {
    %c0_i32 = arith.constant 0 : i32
    %c0_i32_0 = arith.constant 0 : i32
    return %arg0, %c0_i32 : i32, i32
  }
  func.func @transform_1(%arg0: i32) -> (i32, i32) {
    %c0_i32 = arith.constant 0 : i32
    %c0_i32_0 = arith.constant 0 : i32
    return %arg0, %c0_i32 : i32, i32
  }
  func.func @transform_2(%arg0: i32) -> (i32, i32) {
    %c0_i32 = arith.constant 0 : i32
    %c0_i32_0 = arith.constant 0 : i32
    return %arg0, %c0_i32 : i32, i32
  }
  func.func @transform_3(%arg0: i32) -> (i32, i32) {
    %c0_i32 = arith.constant 0 : i32
    %c0_i32_0 = arith.constant 0 : i32
    %c0_i32_1 = arith.constant 0 : i32
    return %c0_i32, %c0_i32_0 : i32, i32
  }
}

</mosaic_0001>

<bundles_post_ra>
// kernel: tpu_custom_call.1
= control target key start
LH: loop header
LB: loop body
LE: loop exit
PB: predicated region body
PF: predicated region fallthrough
CT: control target
= control target key end

     0   :  { %8 = vsyncpa [#allocation3], 0  ;;  %s493_s12 = smov 0   ;;  %s543_s0 = inlined_call_operand.vmem [shape: f32[50,32], index: 0, kind: input, shape index: {}]   ;;  %s544_s1 = inlined_call_operand.vmem [shape: f32[50,32], index: 1, kind: input, shape index: {}]   ;;  %s545_s2 = inlined_call_operand.vmem [shape: f32[50,32], index: 2, kind: input, shape index: {}]   ;;  %s546_s3 = inlined_call_operand.hbm [shape: f32[8,128], index: 3, kind: output, shape index: {}]  }
   0x1 LB: > { %s499_s13 = sadd.s32 4294967295, %s469_s12   ;;  %p403_p0 = scmp.ge.s32.totalorder %s469_s12, 1  ;;  %s469_s12 = sphi %s493_s12, %s14_s12  }
   0x2   : > { %p180_p1 = scmp.lt.s32.totalorder %s469_s12, 5 }
   0x4   : > { %p181_p2 = pnand %p403_p0, %p180_p1 }
   0x5   : > { %s404_s14 = sshll.u32 (!%p181_p2), %s499_s13, 1  ;;  %vm279_vm0 = vcmask (!%p181_p2), 261120   ;;  %p410_p4 = scmp.ne.s32.totalorder (!%p181_p2), %s499_s13, 0 }
   0x6   : > { %184 = sbr.rel (%p181_p2) target bundleno = 240 (0xf0), region = 32  ;;  %p226_p3 = scmp.lt.s32.totalorder (!%p181_p2), %s404_s14, 6 }
   0xd   : > { %s548_s14 = smov (!%p226_p3, %s404_s14), 6  ;;  %v471_v24 = vmov (!%p410_p4), 0.0  }
   0xe   : > { %s405_s15 = sshll.u32 %s548_s14, 3  ;;  %294 = vst [vmem:[#allocation2] sm:$0xff] (!%p410_p4), %v471_v24 }
   0xf   : > { %s229_s18 = scalar_lea.vmem %s543_s0, %s405_s15  ;;  %s243_s21 = scalar_lea.vmem %s544_s1, %s405_s15 }
  0x10   : > { %s257_s24 = scalar_lea.vmem %s545_s2, %s405_s15  ;;  %v263_v0 = vld [vmem:[%s229_s18] sm:$0xff]  ;;  %v264_v2 = vld [vmem:[%s229_s18 + $0x8] sm:$0xff] }
  0x11   : > { %v265_v1 = vld [vmem:[%s243_s21] sm:$0xff]  ;;  %v266_v5 = vld [vmem:[%s243_s21 + $0x8] sm:$0xff] }
  0x12   : > { %v267_v3 = vld [vmem:[%s257_s24] sm:$0xff]  ;;  %v269_v4 = vsub.f32 %v263_v0, %v265_v1  ;;  %v268_v6 = vld [vmem:[%s257_s24 + $0x8] sm:$0xff]  ;;  %v270_v8 = vsub.f32 %v264_v2, %v266_v5 }
  0x13   : > { %v271_v7 = vsub.f32 %v263_v0, %v267_v3  ;;  %v272_v9 = vsub.f32 %v264_v2, %v268_v6 }
  0x14   : > { %v273_v10 = vmul.f32 %v269_v4, %v269_v4  ;;  %v274_v12 = vmul.f32 %v270_v8, %v270_v8 }
  0x15   : > { %v275_v11 = vmul.f32 %v271_v7, %v271_v7  ;;  %v276_v13 = vmul.f32 %v272_v9, %v272_v9 }
  0x17   : > { %v277_v14 = vsub.f32 %v273_v10, %v275_v11  ;;  %v278_v15 = vsub.f32 %v274_v12, %v276_v13 }
  0x19   : > { %v280_v16 = vsel %vm279_vm0, %v277_v14, 0.0  ;;  %v283_v17 = vsel %vm279_vm0, %v278_v15, 0.0 }
  0x1a   : > { %281 = vadd.xlane.f32.xlu0 %v280_v16 }
  0x1e   : > { %284 = vadd.xlane.f32.xlu0 %v283_v17 }
  0xa7   : > { %v282_v18 = vpop.xlane.xlu0 %281 }
  0xa8   : > { %v286_v19 = vadd.f32 1.0, %v282_v18  ;;  %293 = sbr.rel (%p410_p4) target bundleno = 175 (0xaf), region = 36 }
  0xaa   : > { %v288_v20 = vmax.f32 %v286_v19, 0.0 }
  0xab   : > { %v285_v21 = vpop.xlane.xlu0 %284 }
  0xac   : > { %v287_v22 = vadd.f32 1.0, %v285_v21 }
  0xae   : > { %v289_v23 = vmax.f32 %v287_v22, 0.0 }
  0xaf PF: > { %p411_p5 = scmp.ne.s32.totalorder %s499_s13, 3 }
  0xb0   : > { %v299_v25 = vlaneseq (!%p411_p5)  ;;  %v313_v33 = vld [vmem:[#allocation2] sm:$0xff] (!%p411_p5) }
  0xb1   : > { %298 = sbr.rel (%p411_p5) target bundleno = 197 (0xc5), region = 40 }
  0xb2   : > { %v300_v26 = vshrl.u32 (!%p411_p5), %v299_v25, 7 }
  0xb4   : > { %vm302_vm1 = vcmp.lt.s32.totalorder (!%p411_p5), %v300_v26, 2 }
  0xb5   : > { %v304_v27 = vsel (!%p411_p5), %vm302_vm1, %v288_v20, 0.0 }
  0xb6   : > { %v307_v28 = vrot.slane (!%p411_p5), %v304_v27, 4 }
  0xb8   : > { %v308_v29 = vadd.f32 %v307_v28, %v304_v27 }
  0xba   : > { %v309_v30 = vrot.slane %v308_v29, 2 }
  0xbc   : > { %v310_v31 = vadd.f32 %v309_v30, %v308_v29 }
  0xbe   : > { %v311_v32 = vrot.slane %v310_v31, 1 }
  0xc0   : > { %v312_v34 = vadd.f32 %v311_v32, %v310_v31 }
  0xc2   : > { %v314_v35 = vadd.f32 %v313_v33, %v312_v34 }
  0xc4   : > { %315 = vst [vmem:[#allocation2] sm:$0xff] %v314_v35 }
  0xc5 PF: > { %p412_p6 = scmp.eq.s32.totalorder %s499_s13, 3 }
  0xc6   : > { %v320_v36 = vadd.f32 (!%p412_p6), %v289_v23, %v288_v20 }
  0xc7   : > { %319 = sbr.rel (%p412_p6) target bundleno = 215 (0xd7), region = 44 }
  0xc8   : > { %v321_v37 = vrot.slane (!%p412_p6), %v320_v36, 4 }
  0xca   : > { %v322_v38 = vadd.f32 (!%p412_p6), %v321_v37, %v320_v36 }
  0xcb   : > { %v327_v42 = vld [vmem:[#allocation2] sm:$0xff] (!%p412_p6) }
  0xcc   : > { %v323_v39 = vrot.slane (!%p412_p6), %v322_v38, 2 }
  0xce   : > { %v324_v40 = vadd.f32 %v323_v39, %v322_v38 }
  0xd0   : > { %v325_v41 = vrot.slane %v324_v40, 1 }
  0xd2   : > { %v326_v43 = vadd.f32 %v325_v41, %v324_v40 }
  0xd4   : > { %v328_v44 = vadd.f32 %v327_v42, %v326_v43 }
  0xd6   : > { %329 = vst [vmem:[#allocation2] sm:$0xff] %v328_v44 }
  0xd7 PF: > { %s472_s25 = smov [#allocation2]  }
  0xd8   : > { %s337_s26 = sshll.u32 %s472_s25, 4  ;;  %s338_s26 = int_to_ptr.vmem [resolvable:$true] %s337_s26 }
  0xd9   : > { %s433_s27 = scalar_lea.vmem %s338_s26, 128  ;;  %p440_p10 = scmp.lt.s32.totalorder %s338_s26, %s338_s26 }
  0xda   : > { %p434_p7 = scmp.ne.s32.totalorder %s338_s26, %s433_s27  ;;  %p441_p11 = scmp.lt.s32.totalorder %s433_s27, %s433_s27 }
  0xdc   : > { %p435_p8 = pnand %p434_p7, %p412_p6  ;;  %p442_p12 = por %p441_p11, %p440_p10 }
  0xde   : > { %p436_p9 = pneg %p435_p8 }
  0xe0   : > { %p443_p13 = pnand %p442_p12, %p436_p9 }
  0xe2   : > { %446 = shalt.err (!%p443_p13)
}
  0xe3   : > { %s447_s30 = scalar_lea.hbm %s546_s3, 128 }
  0xe4   : > { %p448_p0 = scmp.ne.s32.totalorder %s546_s3, %s447_s30  ;;  %p453_p3 = scmp.lt.u32.totalorder %s447_s30, %s546_s3 }
  0xe6   : > { %p449_p1 = pnand %p448_p0, %p412_p6 }
  0xe8   : > { %p450_p2 = pneg %p449_p1 }
  0xea   : > { %p455_p4 = pnand %p453_p3, %p450_p2 }
  0xec   : > { %458 = shalt.err (!%p455_p4)
}
  0xed   : > { %418 = dma.vmem_to_hbm [thread:$0]  (%p412_p6), %s338_s26, 128, %s546_s3, [#allocation3]  }
  0xee   : > { %464 = dma.done.wait (%p412_p6), [#allocation3], 128  }
  0xef   : > { %466 = vsyncadd (%p412_p6), [#allocation3], 4294967168 }
  0xf0 PF: > { %s14_s12 = sadd.s32 1, %s469_s12  }
  0xf1   : > { %p11_p5 = scmp.ge.s32.totalorder %s14_s12, 6  }
  0xf3   :  { %13 = sbr.rel (!%p11_p5) target bundleno = 1 (0x1), region = 77 }
  0xfa   :  { %350 = vsyncpa [#allocation3], 1 }
  0xfb   :  { %352 = vsyncpa [#allocation3 + $0x1], 1 }

</bundles_post_ra>
